<compile_context>
chip_gen: v7x
topology: tpu7x:2x2x1
jax: 0.10.0
libtpu: 0.0.40
codegen_flags: <defaults>
</compile_context>

<pallas_src>
import functools

import jax
import jax.numpy as jnp
from jax.experimental import pallas as pl
from jax.experimental.pallas import tpu as pltpu

SIGMA = 1.0
INPUT_SIZE = 5
HIDDEN = 128
F_PAD = 8  # feature axis padded to a full sublane group; column 5 carries b1


def _round_up(n, m):
    return ((n + m - 1) // m) * m


def _tpu_generation():
    try:
        kind = jax.devices()[0].device_kind.lower()
    except Exception:
        return None
    for tag in ("v7", "v6", "v5"):
        if tag in kind:
            return tag
    return None


def _tuning_for(gen, use_bf16_h):
    """Returns (max batch tile, scoped-VMEM limit bytes, #TensorCores)."""
    if gen == "v7":   # 64 MiB VMEM, 2 TCs: cap f32 tiles, keep >=2 parallel tiles
        return (32768 if use_bf16_h else 16384), 48 << 20, 2
    if gen == "v6":   # 128 MiB physical VMEM (32 MiB default scoped limit)
        return 32768, 64 << 20, 1
    if gen == "v5":   # 128 MiB physical, but only 16 MiB default scoped limit
        return 16384, 96 << 20, 1
    return 8192, 48 << 20, 1


def mlp_policy_kernel(xt_ref, w1a_ref, w2t_ref, b2_ref, loc_ref, *, use_bf16_h):
    # Layer 1 (+ bias via the folded ones-row):
    #   (H, 8) @ (8, TILE_B) -> (H, TILE_B)   [MXU, K=8 aligned]
    pre = jnp.dot(w1a_ref[...], xt_ref[...], preferred_element_type=jnp.float32)
    if use_bf16_h:
        # bf16 tanh: ~2x EUP throughput on v6e/v7x, halves the h footprint.
        h = jnp.tanh(pre.astype(jnp.bfloat16))
        w2 = w2t_ref[...].astype(jnp.bfloat16)
    else:
        h = jnp.tanh(pre)
        w2 = w2t_ref[...]
    # Layer 2: (1, H) @ (H, TILE_B) -> (1, TILE_B), lane-dense output.
    # Kept as jnp.dot with H as the contraction so it stays on the MXU.
    loc_ref[...] = (
        jnp.dot(w2, h, preferred_element_type=jnp.float32) + b2_ref[...]
    )


def mlp_policy_forward(x, scale, normalize, w1, b1, w2, b2,
                       *, tile_b=None, use_bf16_h=None):
    """Returns (loc, sigma) of the Normal distribution produced by MLPPolicy.

    With use_bf16_h=True (auto on v6e/v7x) the hidden activation is bf16 and
    output accuracy relaxes to ~1e-2 absolute vs a pure-f32 reference.
    """
    B, F = x.shape
    H = w1.shape[1]
    assert F <= F_PAD - 1

    gen = _tpu_generation()
    if use_bf16_h is None:
        use_bf16_h = gen in ("v6", "v7")
    tile_max, vmem_limit, n_cores = _tuning_for(gen, use_bf16_h)
    if tile_b is not None:
        tile_max = _round_up(max(128, int(tile_b)), 128)  # force x128 multiple

    # --- one-time parameter transform --------------------------------------
    # Fold (x - scale) / normalize into layer 1, and fold b1 into an augmented
    # weight column that multiplies a constant ones-row appended to x.
    inv_norm = (1.0 / normalize).astype(jnp.float32)            # (1, F)
    w1f = (w1 * inv_norm.T).astype(jnp.float32)                 # (F, H)
    b1f = (b1 - (scale * inv_norm) @ w1).astype(jnp.float32)    # (1, H)

    w1a = jnp.zeros((H, F_PAD), jnp.float32)
    w1a = w1a.at[:, :F].set(w1f.T)
    w1a = w1a.at[:, F].set(b1f.reshape(-1))                     # bias column
    w2t = jnp.asarray(w2.T, jnp.float32)                        # (1, H)
    b2c = jnp.asarray(b2, jnp.float32).reshape(1, 1)            # (1, 1)

    # --- batch tiling (lane axis in multiples of 128) -----------------------
    Bp128 = _round_up(B, 128)
    tile = min(tile_max, Bp128)
    if n_cores > 1 and Bp128 >= 2 * 128:
        # Keep >=2 "parallel" tiles so both v7x TensorCores get work.
        tile = min(tile, _round_up(pl.cdiv(Bp128, n_cores), 128))
    num_tiles = pl.cdiv(Bp128, tile)
    tile = _round_up(pl.cdiv(Bp128, num_tiles), 128)  # minimize pad waste
    Bp = num_tiles * tile

    # Feature-major, lane-dense input with the bias ones-row appended.
    # TODO(synk): producers that can emit x directly as (F_PAD, B) feature-major
    # (optionally bf16) skip this extra HBM transpose/pad pass entirely.
    xt = jnp.concatenate(
        [x.T.astype(jnp.float32),
         jnp.ones((1, B), jnp.float32),
         jnp.zeros((F_PAD - F - 1, B), jnp.float32)], axis=0)   # (F_PAD, B)
    if Bp > B:
        xt = jnp.pad(xt, ((0, 0), (0, Bp - B)))

    cost = pl.CostEstimate(
        flops=int(Bp) * (2 * F_PAD * H + 2 * H + 1),
        transcendentals=int(Bp) * H,
        bytes_accessed=int(Bp) * (F_PAD + 1) * 4 + (H * (F_PAD + 1) + 1) * 4,
    )

    loc_t = pl.pallas_call(
        functools.partial(mlp_policy_kernel, use_bf16_h=use_bf16_h),
        out_shape=jax.ShapeDtypeStruct((1, Bp), jnp.float32),
        grid=(num_tiles,),
        in_specs=[
            pl.BlockSpec((F_PAD, tile), lambda i: (0, i)),   # streamed x tiles
            pl.BlockSpec((H, F_PAD), lambda i: (0, 0)),      # resident weights
            pl.BlockSpec((1, H), lambda i: (0, 0)),
            pl.BlockSpec((1, 1), lambda i: (0, 0)),
        ],
        out_specs=pl.BlockSpec((1, tile), lambda i: (0, i)),
        compiler_params=pltpu.CompilerParams(
            dimension_semantics=("parallel",),
            vmem_limit_bytes=vmem_limit),
        cost_estimate=cost,
    )(xt, w1a, w2t, b2c)

    loc = loc_t[0, :B].reshape(B, 1)
    return loc, jnp.float32(SIGMA)


def init_params(key, input_size=INPUT_SIZE, hidden=HIDDEN):
    """Deterministic parameter init mirroring nn.Linear's U(-1/sqrt(fan_in), ...)."""
    k1, k2, k3, k4 = jax.random.split(key, 4)
    bound1 = 1.0 / jnp.sqrt(jnp.float32(input_size))
    bound2 = 1.0 / jnp.sqrt(jnp.float32(hidden))
    w1 = jax.random.uniform(k1, (input_size, hidden), jnp.float32, -bound1, bound1)
    b1 = jax.random.uniform(k2, (1, hidden), jnp.float32, -bound1, bound1)
    w2 = jax.random.uniform(k3, (hidden, 1), jnp.float32, -bound2, bound2)
    b2 = jax.random.uniform(k4, (1, 1), jnp.float32, -bound2, bound2)
    return w1, b1, w2, b2


if __name__ == "__main__":
    key = jax.random.PRNGKey(0)
    k_x, k_p, k_s, k_n, k_x2 = jax.random.split(key, 5)

    w1, b1, w2, b2 = init_params(k_p)

    # Non-trivial scale/normalize to exercise the folded-normalization path
    # (PyTorch defaults would be zeros / ones).
    scale = 0.5 * jax.random.normal(k_s, (1, INPUT_SIZE), jnp.float32)
    normalize = 1.0 + jax.random.uniform(k_n, (1, INPUT_SIZE), jnp.float32)

    def ref_fwd(xv):
        return jnp.tanh(((xv - scale) / normalize) @ w1 + b1) @ w2 + b2

    gen = _tpu_generation()
    bf16_auto = gen in ("v6", "v7")
    # bf16 hidden activation (auto on v6e/v7x) relaxes the tolerance.
    atol = 5e-2 if bf16_auto else 1e-4

    # Small single-tile case.
    B = 8
    x = jax.random.normal(k_x, (B, INPUT_SIZE), jnp.float32)
    loc, sigma = mlp_policy_forward(x, scale, normalize, w1, b1, w2, b2)
    jax.block_until_ready(loc)
    assert loc.shape == (B, 1)
    assert jnp.allclose(loc, ref_fwd(x), atol=atol, rtol=1e-3), "mismatch (B=8)"
    assert float(sigma) == SIGMA

    # Multi-tile + ragged-batch case (small forced tile to exercise the grid,
    # lane padding, and the >=2-tile megacore path).
    B2 = 300
    x2 = jax.random.normal(k_x2, (B2, INPUT_SIZE), jnp.float32)
    loc2, _ = mlp_policy_forward(x2, scale, normalize, w1, b1, w2, b2, tile_b=128)
    jax.block_until_ready(loc2)
    assert loc2.shape == (B2, 1)
    assert jnp.allclose(loc2, ref_fwd(x2), atol=atol, rtol=1e-3), "mismatch (B=300)"

    print("KERNEL_OK")
</pallas_src>

<mosaic_0001>
module attributes {stable_mosaic.version = 11 : i64} {
  func.func @mlp_policy_kernel(%arg0: i32, %arg1: memref<8x128xf32, #tpu.memory_space<vmem>>, %arg2: memref<128x8xf32, #tpu.memory_space<vmem>>, %arg3: memref<1x128xf32, #tpu.memory_space<vmem>>, %arg4: memref<1x1xf32, #tpu.memory_space<vmem>>, %arg5: memref<1x128xf32, #tpu.memory_space<vmem>>) attributes {dimension_semantics = [#tpu.dimension_semantics<parallel>], iteration_bounds = array<i64: 1>, scalar_prefetch = 0 : i64, scratch_operands = 0 : i64, tpu.core_type = #tpu.core_type<tc>, window_params = [{transform_indices = @transform_0, window_bounds = array<i64: 8, 128>}, {pipeline_mode = #tpu.pipeline_mode<synchronous>, transform_indices = @transform_1, window_bounds = array<i64: 128, 8>}, {pipeline_mode = #tpu.pipeline_mode<synchronous>, transform_indices = @transform_2, window_bounds = array<i64: 1, 128>}, {pipeline_mode = #tpu.pipeline_mode<synchronous>, transform_indices = @transform_3, window_bounds = array<i64: 1, 1>}, {transform_indices = @transform_4, window_bounds = array<i64: 1, 128>}]} {
    %c0 = arith.constant 0 : index
    %c0_0 = arith.constant 0 : index
    %0 = vector.load %arg2[%c0, %c0_0] : memref<128x8xf32, #tpu.memory_space<vmem>>, vector<128x8xf32>
    %c0_1 = arith.constant 0 : index
    %c0_2 = arith.constant 0 : index
    %1 = vector.load %arg1[%c0_1, %c0_2] : memref<8x128xf32, #tpu.memory_space<vmem>>, vector<8x128xf32>
    %cst = arith.constant dense<0.000000e+00> : vector<128x128xf32>
    %2 = tpu.matmul %0, %1, %cst {dimension_numbers = #tpu.dot_dimension_numbers<[1], [0], [0], [1], [0, 0, 1, 1], [], []>} : vector<128x8xf32>, vector<8x128xf32>, vector<128x128xf32> -> vector<128x128xf32>
    %3 = math.tanh %2 : vector<128x128xf32>
    %c0_3 = arith.constant 0 : index
    %c0_4 = arith.constant 0 : index
    %4 = vector.load %arg3[%c0_3, %c0_4] : memref<1x128xf32, #tpu.memory_space<vmem>>, vector<1x128xf32>
    %cst_5 = arith.constant dense<0.000000e+00> : vector<1x128xf32>
    %5 = tpu.matmul %4, %3, %cst_5 {dimension_numbers = #tpu.dot_dimension_numbers<[1], [0], [0], [1], [0, 0, 1, 1], [], []>} : vector<1x128xf32>, vector<128x128xf32>, vector<1x128xf32> -> vector<1x128xf32>
    %c0_6 = arith.constant 0 : index
    %c0_7 = arith.constant 0 : index
    %6 = vector.load %arg4[%c0_6, %c0_7] : memref<1x1xf32, #tpu.memory_space<vmem>>, vector<1x1xf32>
    %7 = vector.broadcast %6 : vector<1x1xf32> to vector<1x128xf32>
    %8 = arith.addf %5, %7 : vector<1x128xf32>
    %c0_8 = arith.constant 0 : index
    %c0_9 = arith.constant 0 : index
    %9 = vector.load %arg5[%c0_8, %c0_9] : memref<1x128xf32, #tpu.memory_space<vmem>>, vector<1x128xf32>
    tpu.vector_store %arg5[%c0_8, %c0_9], %8 {strides = array<i32>} : memref<1x128xf32, #tpu.memory_space<vmem>>, vector<1x128xf32>,
    return
  }
  func.func @transform_0(%arg0: i32) -> (i32, i32) {
    %c0_i32 = arith.constant 0 : i32
    %c0_i32_0 = arith.constant 0 : i32
    return %c0_i32, %arg0 : i32, i32
  }
  func.func @transform_1(%arg0: i32) -> (i32, i32) {
    %c0_i32 = arith.constant 0 : i32
    %c0_i32_0 = arith.constant 0 : i32
    %c0_i32_1 = arith.constant 0 : i32
    return %c0_i32, %c0_i32_0 : i32, i32
  }
  func.func @transform_2(%arg0: i32) -> (i32, i32) {
    %c0_i32 = arith.constant 0 : i32
    %c0_i32_0 = arith.constant 0 : i32
    %c0_i32_1 = arith.constant 0 : i32
    return %c0_i32, %c0_i32_0 : i32, i32
  }
  func.func @transform_3(%arg0: i32) -> (i32, i32) {
    %c0_i32 = arith.constant 0 : i32
    %c0_i32_0 = arith.constant 0 : i32
    %c0_i32_1 = arith.constant 0 : i32
    return %c0_i32, %c0_i32_0 : i32, i32
  }
  func.func @transform_4(%arg0: i32) -> (i32, i32) {
    %c0_i32 = arith.constant 0 : i32
    %c0_i32_0 = arith.constant 0 : i32
    return %c0_i32, %arg0 : i32, i32
  }
}

</mosaic_0001>

<bundles_post_ra>
// kernel: tpu_custom_call.1
= control target key start
LH: loop header
LB: loop body
LE: loop exit
PB: predicated region body
PF: predicated region fallthrough
CT: control target
= control target key end

     0   :  { %s663_s0 = inlined_call_operand.vmem [shape: f32[8,128], index: 0, kind: input, shape index: {}]   ;;  %s664_s1 = inlined_call_operand.vmem [shape: f32[128,8], index: 1, kind: input, shape index: {}]   ;;  %s665_s2 = inlined_call_operand.vmem [shape: f32[1,128], index: 2, kind: input, shape index: {}]   ;;  %s666_s3 = inlined_call_operand.<no memory space> [shape: f32[1,1], index: 3, kind: input, shape index: {}]   ;;  %s667_s4 = inlined_call_operand.hbm [shape: f32[1,128], index: 4, kind: output, shape index: {}]  }
   0x1   :  { %v9_v0 = vstv %s666_s3 }
   0x2   :  { %10 = vst [vmem:[#allocation2] sm:$0x1] %v9_v0 }
   0x3   :  { %v36_v1 = vld [vmem:[%s663_s0] sm:$0xff]  ;;  %vm37_vm0 = vcmask 64512   ;;  %v21_v3 = vld [vmem:[%s664_s1 + $0x8] sm:$0xff]  ;;  %v22_v4 = vld [vmem:[%s664_s1 + $0x10] sm:$0xff] }
   0x4   :  { %v20_v2 = vld [vmem:[%s664_s1] sm:$0xff]  ;;  %393 = vmatprep.subr.mxu0 %v36_v1  ;;  %v23_v5 = vld [vmem:[%s664_s1 + $0x18] sm:$0xff] }
   0x5   :  { %395 = vmatprep.mubr.msk.f32.mxu0 %vm37_vm0, %v20_v2  ;;  %394 = vmatpush3.msra.mxu0 %v36_v1  ;;  %v24_v6 = vld [vmem:[%s664_s1 + $0x20] sm:$0xff] }
   0x6   :  { %396 = vmatmul.mubr.msk.f32.vlgmr.msra.gmra.mrb[0].mxu0 %vm37_vm0, %v21_v3 }
   0x7   :  { %398 = vmatprep.mubr.msk.f32.mxu0 %vm37_vm0, %v22_v4 }
   0x8   :  { %11 = vsyncpa [#allocation4], 0  ;;  %v25_v7 = vld [vmem:[%s664_s1 + $0x28] sm:$0xff]  ;;  %v26_v8 = vld [vmem:[%s664_s1 + $0x30] sm:$0xff]  ;;  %v540_v18 = vmov 0.0|0.0   ;;  %vm541_vm1 = vmmov 0   ;;  %v254_v63 = vlaneseq }
   0x9   :  { %v27_v9 = vld [vmem:[%s664_s1 + $0x38] sm:$0xff]  ;;  %v28_v10 = vld [vmem:[%s664_s1 + $0x40] sm:$0xff]  ;;  %v29_v11 = vld [vmem:[%s664_s1 + $0x48] sm:$0xff]  ;;  %454 = vmatprep.subr.bf16.mxu1 %v540_v18  ;;  %v542_v19 = vmov 0.0   ;;  %v543_v21 = vmov 0   ;;  %s544_s24 = smov [#allocation3]  }
   0xa   :  { %399 = vmatmul.mubr.msk.f32.gmra.mrb[2].mxu0 %vm37_vm0, %v23_v5  ;;  %v30_v12 = vld [vmem:[%s664_s1 + $0x50] sm:$0xff]  ;;  %v31_v13 = vld [vmem:[%s664_s1 + $0x58] sm:$0xff]  ;;  %v32_v14 = vld [vmem:[%s664_s1 + $0x60] sm:$0xff]  ;;  %451 = vmatprep.mubr.msk.f32.mxu1 %vm541_vm1, %v542_v19  ;;  %v255_v0 = vshrl.u32 %v254_v63, 7  ;;  %s335_s0 = sshll.u32 %s544_s24, 4  ;;  %s336_s0 = int_to_ptr.vmem [resolvable:$true] %s335_s0 }
   0xb   :  { %401 = vmatprep.mubr.msk.f32.mxu0 %vm37_vm0, %v24_v6  ;;  %v33_v15 = vld [vmem:[%s664_s1 + $0x68] sm:$0xff]  ;;  %v34_v16 = vld [vmem:[%s664_s1 + $0x70] sm:$0xff]  ;;  %v35_v17 = vld [vmem:[%s664_s1 + $0x78] sm:$0xff]  ;;  %483 = vset.pattern.permute.xlu0 %v543_v21  ;;  %s516_s3 = scalar_lea.vmem %s336_s0, 16  ;;  %s520_s25 = scalar_lea.vmem %s336_s0, 32 }
   0xc   :  { %v248_v20 = vld [vmem:[#allocation2] sm:$0x1]  ;;  %v256_v1 = vsub.s32 0, %v255_v0  ;;  %p517_p0 = scmp.ne.s32.totalorder %s336_s0, %s516_s3  ;;  %p521_p1 = scmp.lt.s32.totalorder %s336_s0, %s336_s0 }
   0xd   :  { %251 = vperm.xlu0 %483, %v248_v20   ;;  %v247_v62 = vld [vmem:[%s665_s2] sm:$0x1]  ;;  %p522_p2 = scmp.lt.s32.totalorder %s520_s25, %s516_s3 }
   0xe   :  { %402 = vmatmul.mubr.msk.f32.gmra.mrb[4].mxu0 %vm37_vm0, %v25_v7 }
   0xf   :  { %404 = vmatprep.mubr.msk.f32.mxu0 %vm37_vm0, %v26_v8  ;;  %p523_p3 = por %p522_p2, %p521_p1 }
  0x11   :  { %p524_p4 = pnand %p523_p3, %p517_p0 }
  0x12   :  { %405 = vmatmul.mubr.msk.f32.gmra.mrb[6].mxu0 %vm37_vm0, %v27_v9 }
  0x13   :  { %407 = vmatprep.mubr.msk.f32.mxu0 %vm37_vm0, %v28_v10 }
  0x16   :  { %408 = vmatmul.mubr.msk.f32.gmra.mrb[8].mxu0 %vm37_vm0, %v29_v11 }
  0x17   :  { %410 = vmatprep.mubr.msk.f32.mxu0 %vm37_vm0, %v30_v12 }
  0x1a   :  { %411 = vmatmul.mubr.msk.f32.gmra.mrb[10].mxu0 %vm37_vm0, %v31_v13 }
  0x1b   :  { %413 = vmatprep.mubr.msk.f32.mxu0 %vm37_vm0, %v32_v14 }
  0x1e   :  { %414 = vmatmul.mubr.msk.f32.gmra.mrb[12].mxu0 %vm37_vm0, %v33_v15 }
  0x1f   :  { %416 = vmatprep.mubr.msk.f32.mxu0 %vm37_vm0, %v34_v16 }
  0x22   :  { %417 = vmatmul.mubr.msk.f32.gmra.mrb[14].mxu0 %vm37_vm0, %v35_v17 }
  0x8c   :  { %v252_v2 = vpop.permute.xlu0 %251 }
  0x8d   :  { %v257_v3 = vrot.slane %v252_v2, %v256_v1 }
  0xd9   :  { %v397_v22 = vpop.f32.mrb[0].mxu0 }
  0xda   :  { %484 = vtanh.f32 %v397_v22  ;;  %v152_v23 = vpop.f32.mrb[1].mxu0 }
  0xdb   :  { %486 = vtanh.f32 %v152_v23 }
  0xdd   :  { %v400_v24 = vpop.f32.mrb[2].mxu0 }
  0xde   :  { %488 = vtanh.f32 %v400_v24  ;;  %v162_v25 = vpop.f32.mrb[3].mxu0 }
  0xdf   :  { %490 = vtanh.f32 %v162_v25 }
  0xe1   :  { %v403_v26 = vpop.f32.mrb[4].mxu0 }
  0xe2   :  { %492 = vtanh.f32 %v403_v26  ;;  %v172_v27 = vpop.f32.mrb[5].mxu0 }
  0xe3   :  { %494 = vtanh.f32 %v172_v27 }
  0xe4   :  { %v485_v28 = vpop.eup %484 }
  0xe5   :  { %v487_v29 = vpop.eup %486  ;;  %v406_v30 = vpop.f32.mrb[6].mxu0 }
  0xe6   :  { %496 = vtanh.f32 %v406_v30  ;;  %v182_v31 = vpop.f32.mrb[7].mxu0  ;;  %v455_v32 = vpack.c.bf16 %v485_v28, %v487_v29 }
  0xe7   :  { %498 = vtanh.f32 %v182_v31 }
  0xe8   :  { %v489_v33 = vpop.eup %488  ;;  %456 = vmatpush3.bf16.msra.mxu1 %v455_v32 }
  0xe9   :  { %v491_v34 = vpop.eup %490  ;;  %v409_v35 = vpop.f32.mrb[8].mxu0  ;;  %457 = vmatprep.subr.bf16.mxu1 %v540_v18 }
  0xea   :  { %500 = vtanh.f32 %v409_v35  ;;  %v192_v36 = vpop.f32.mrb[9].mxu0  ;;  %v458_v37 = vpack.c.bf16 %v489_v33, %v491_v34 }
  0xeb   :  { %502 = vtanh.f32 %v192_v36 }
  0xec   :  { %v493_v38 = vpop.eup %492  ;;  %459 = vmatpush3.bf16.msra.mxu1 %v458_v37 }
  0xed   :  { %v495_v39 = vpop.eup %494  ;;  %v412_v40 = vpop.f32.mrb[10].mxu0  ;;  %460 = vmatprep.subr.bf16.mxu1 %v540_v18 }
  0xee   :  { %504 = vtanh.f32 %v412_v40  ;;  %v202_v41 = vpop.f32.mrb[11].mxu0  ;;  %v461_v42 = vpack.c.bf16 %v493_v38, %v495_v39 }
  0xef   :  { %506 = vtanh.f32 %v202_v41 }
  0xf0   :  { %v497_v43 = vpop.eup %496  ;;  %462 = vmatpush3.bf16.msra.mxu1 %v461_v42 }
  0xf1   :  { %v499_v44 = vpop.eup %498  ;;  %v415_v45 = vpop.f32.mrb[12].mxu0  ;;  %463 = vmatprep.subr.bf16.mxu1 %v540_v18 }
  0xf2   :  { %508 = vtanh.f32 %v415_v45  ;;  %v212_v46 = vpop.f32.mrb[13].mxu0  ;;  %v464_v47 = vpack.c.bf16 %v497_v43, %v499_v44 }
  0xf3   :  { %510 = vtanh.f32 %v212_v46 }
  0xf4   :  { %v501_v48 = vpop.eup %500  ;;  %465 = vmatpush3.bf16.msra.mxu1 %v464_v47 }
  0xf5   :  { %v503_v49 = vpop.eup %502  ;;  %v418_v50 = vpop.f32.mrb[14].mxu0  ;;  %466 = vmatprep.subr.bf16.mxu1 %v540_v18 }
  0xf6   :  { %512 = vtanh.f32 %v418_v50  ;;  %v222_v51 = vpop.f32.mrb[15].mxu0  ;;  %v467_v52 = vpack.c.bf16 %v501_v48, %v503_v49 }
  0xf7   :  { %514 = vtanh.f32 %v222_v51 }
  0xf8   :  { %v505_v53 = vpop.eup %504  ;;  %468 = vmatpush3.bf16.msra.mxu1 %v467_v52 }
  0xf9   :  { %v507_v54 = vpop.eup %506  ;;  %469 = vmatprep.subr.bf16.mxu1 %v540_v18 }
  0xfa   :  { %v470_v55 = vpack.c.bf16 %v505_v53, %v507_v54 }
  0xfc   :  { %v509_v56 = vpop.eup %508  ;;  %471 = vmatpush3.bf16.msra.mxu1 %v470_v55 }
  0xfd   :  { %v511_v57 = vpop.eup %510  ;;  %472 = vmatprep.subr.bf16.mxu1 %v540_v18 }
  0xfe   :  { %v473_v58 = vpack.c.bf16 %v509_v56, %v511_v57 }
 0x100   :  { %v513_v59 = vpop.eup %512  ;;  %474 = vmatpush3.bf16.msra.mxu1 %v473_v58 }
 0x101   :  { %v515_v60 = vpop.eup %514  ;;  %475 = vmatprep.subr.bf16.mxu1 %v540_v18 }
 0x102   :  { %v476_v61 = vpack.c.bf16 %v513_v59, %v515_v60 }
 0x104   :  { %477 = vmatpush3.bf16.msra.mxu1 %v476_v61 }
 0x107   :  { %452 = vmatmul.mubr.f32.vlgmr.msra.gmra.mrb[0].mxu1 %v247_v62 }
 0x1da   :  { %v324_v4 = vpop.f32.mrb[0].mxu1 }
 0x1db   :  { %v325_v5 = vadd.f32 %v324_v4, %v257_v3  ;;  %v453_v6 = vpop.f32.mrb[1].mxu1 }
 0x1dd   :  { %328 = vst [vmem:[#allocation3] sm:$0x1] %v325_v5 }
 0x1de   :  { %527 = shalt.err (!%p524_p4)
}
 0x1df   :  { %s528_s27 = scalar_lea.hbm %s667_s4, 16 }
 0x1e0   :  { %p529_p5 = scmp.ne.s32.totalorder %s667_s4, %s528_s27  ;;  %p532_p6 = scmp.lt.u32.totalorder %s528_s27, %s667_s4 }
 0x1e2   :  { %p534_p7 = pnand %p532_p6, %p529_p5 }
 0x1e4   :  { %537 = shalt.err (!%p534_p7)
}
 0x1e5   :  { %338 = dma.vmem_to_hbm [thread:$0]  %s336_s0, 16, %s667_s4, [#allocation4]  }
 0x1e6   :  { %538 = dma.done.wait [#allocation4], 16  }
 0x1e7   :  { %539 = vsyncadd [#allocation4], 4294967280 }
 0x1e8   :  { %342 = vsyncpa [#allocation4], 1 }

</bundles_post_ra>
